<compile_context>
chip_gen: v6e
topology: v6e:2x2x1
jax: 0.10.0
libtpu: 0.0.40
codegen_flags: <defaults>
</compile_context>

<pallas_src>
import functools

import jax
import jax.numpy as jnp
from jax import lax
from jax.experimental import pallas as pl
from jax.experimental.pallas import tpu as pltpu


# --------------------------------------------------------------------------- #
# Kernel 1: per-output-row DoRA scale  s = mag / ||W + scaling * B @ A||      #
#   grid = (out_dim tiles, in_dim tiles); sum-of-squares accumulated in VMEM. #
# --------------------------------------------------------------------------- #
def _dora_scale_kernel(w_ref, a_ref, b_ref, mag_ref, s_ref, ssq_ref, *, scaling):
    k = pl.program_id(1)

    @pl.when(k == 0)
    def _():
        ssq_ref[...] = jnp.zeros_like(ssq_ref)

    # (to, r) @ (r, tk) -> (to, tk), all math in f32 for the norm.
    ba = jnp.dot(b_ref[...].astype(jnp.float32), a_ref[...].astype(jnp.float32),
                 preferred_element_type=jnp.float32)
    w_eff = w_ref[...].astype(jnp.float32) + scaling * ba
    ssq_ref[...] += jnp.sum(w_eff * w_eff, axis=1, keepdims=True)        # (to, 1)

    @pl.when(k == pl.num_programs(1) - 1)
    def _():
        norm = jnp.sqrt(ssq_ref[...])                                    # (to, 1)
        # Same behaviour as the reference: no epsilon (a zero column -> inf/NaN).
        s_ref[...] = mag_ref[...] * pl.reciprocal(norm, approx=False)


# --------------------------------------------------------------------------- #
# Kernel 2: tiled GEMM with on-the-fly effective weight + row scale:          #
#   out[tn, to] = s * (x[tn, tk] @ (W[to, tk] + scaling * B[to,r] @ A[r,tk]).T)#
# --------------------------------------------------------------------------- #
def _dora_matmul_kernel(x_ref, w_ref, a_ref, b_ref, s_ref, o_ref, acc_ref, *, scaling):
    k = pl.program_id(2)

    @pl.when(k == 0)
    def _():
        acc_ref[...] = jnp.zeros_like(acc_ref)

    # Recompute the effective-weight tile (no HBM round-trip for w_eff).
    ba = jnp.dot(b_ref[...], a_ref[...], preferred_element_type=jnp.float32)  # (to, tk)
    w_eff = (w_ref[...].astype(jnp.float32) + scaling * ba).astype(w_ref.dtype)

    # Contract both last dims ("x @ w_eff.T") - no wrapper transpose needed.
    acc_ref[...] += lax.dot_general(
        x_ref[...], w_eff,
        dimension_numbers=(((1,), (1,)), ((), ())),
        preferred_element_type=jnp.float32)

    @pl.when(k == pl.num_programs(2) - 1)
    def _():
        o_ref[...] = (s_ref[...] * acc_ref[...]).astype(o_ref.dtype)


def _pick_tile(dim, target, align=128):
    """Largest divisor of `dim` that is <= target and a multiple of `align`.

    Falls back to the full dimension (always layout-legal) if no aligned divisor
    exists; never returns a tile that violates the (8, 128) block constraint.
    """
    if dim <= target:
        return dim
    t = (target // align) * align
    while t >= align:
        if dim % t == 0:
            return t
        t -= align
    return dim


def dora_forward(x, weight, lora_a, lora_b, magnitude, *, scaling,
                 tile_n=512, tile_out=512, tile_k=1024,
                 compute_dtype=jnp.bfloat16):
    """DoRA forward.

    x: (N, in_dim); weight: (out_dim, in_dim); lora_a: (rank, in_dim);
    lora_b: (out_dim, rank); magnitude: (out_dim,).
    compute_dtype: dtype of the MXU inputs (defaults to bfloat16 for peak MXU
    throughput and half the HBM traffic).  Accumulation and the norm/scale are
    always computed in f32.
    """
    n, in_dim = x.shape
    out_dim = weight.shape[0]
    rank = lora_a.shape[0]

    # Single cast of every operand; both kernels read the same arrays.
    xc = x.astype(compute_dtype)
    wc = weight.astype(compute_dtype)
    ac = lora_a.astype(compute_dtype)
    bc = lora_b.astype(compute_dtype)
    mag = magnitude.reshape(out_dim, 1).astype(jnp.float32)

    # ---- Kernel 1: DoRA per-row scale (no w_eff writeback to HBM) ---- #
    to_p = _pick_tile(out_dim, 256)
    tk_p = _pick_tile(in_dim, 512)
    s_col = pl.pallas_call(
        functools.partial(_dora_scale_kernel, scaling=scaling),
        out_shape=jax.ShapeDtypeStruct((out_dim, 1), jnp.float32),
        grid=(out_dim // to_p, in_dim // tk_p),
        in_specs=[
            pl.BlockSpec((to_p, tk_p), lambda j, k: (j, k)),   # W
            pl.BlockSpec((rank, tk_p), lambda j, k: (0, k)),   # A
            pl.BlockSpec((to_p, rank), lambda j, k: (j, 0)),   # B
            pl.BlockSpec((to_p, 1), lambda j, k: (j, 0)),      # magnitude
        ],
        out_specs=pl.BlockSpec((to_p, 1), lambda j, k: (j, 0)),
        scratch_shapes=[pltpu.VMEM((to_p, 1), jnp.float32)],
        compiler_params=pltpu.CompilerParams(
            dimension_semantics=("parallel", "arbitrary"),
            vmem_limit_bytes=32 * 1024 * 1024),
    )(wc, ac, bc, mag)
    s_row = s_col.reshape(1, out_dim)   # row-major (out,1)->(1,out): free reshape

    # ---- Kernel 2: tiled GEMM + row scale ---- #
    tn = _pick_tile(n, tile_n, align=8)
    to = _pick_tile(out_dim, tile_out)
    tk = _pick_tile(in_dim, tile_k)
    # v7x megacore: make sure the two parallel grid axes have >= 2 points when N
    # is small so both TensorCores get work (keep tiles 128-aligned).
    if (n // tn) * (out_dim // to) < 2 and to % 256 == 0 and out_dim % (to // 2) == 0:
        to //= 2

    out = pl.pallas_call(
        functools.partial(_dora_matmul_kernel, scaling=scaling),
        out_shape=jax.ShapeDtypeStruct((n, out_dim), x.dtype),
        grid=(n // tn, out_dim // to, in_dim // tk),
        in_specs=[
            pl.BlockSpec((tn, tk), lambda i, j, k: (i, k)),    # x
            pl.BlockSpec((to, tk), lambda i, j, k: (j, k)),    # W      (natural layout)
            pl.BlockSpec((rank, tk), lambda i, j, k: (0, k)),  # A
            pl.BlockSpec((to, rank), lambda i, j, k: (j, 0)),  # B
            pl.BlockSpec((1, to), lambda i, j, k: (0, j)),     # s
        ],
        out_specs=pl.BlockSpec((tn, to), lambda i, j, k: (i, j)),
        scratch_shapes=[pltpu.VMEM((tn, to), jnp.float32)],
        compiler_params=pltpu.CompilerParams(
            dimension_semantics=("parallel", "parallel", "arbitrary"),
            vmem_limit_bytes=48 * 1024 * 1024),
    )(xc, wc, ac, bc, s_row)
    return out


def dora_reference(x, weight, lora_a, lora_b, magnitude, *, scaling):
    """Pure-JAX transcription of _DoraReference.forward (dropout=0, no bias)."""
    base = x @ weight.T
    lora = (x @ lora_a.T) @ lora_b.T
    lora_weight = lora_b @ lora_a
    w_eff = weight + scaling * lora_weight
    weight_norm = jnp.sqrt(jnp.sum(w_eff * w_eff, axis=1))
    s = (magnitude / weight_norm).reshape(1, -1)
    result_dora = (s - 1.0) * base + s * lora * scaling
    return base + result_dora


if __name__ == "__main__":
    # Small shapes: batch=2, seq=8, in_dim=32, out_dim=32, rank=4, alpha=8.
    batch, seq, in_dim, out_dim, rank = 2, 8, 32, 32, 4
    alpha = 8.0
    scaling = alpha / rank
    dtype = jnp.float32

    key = jax.random.PRNGKey(0)
    kx, kw, ka, kb, km = jax.random.split(key, 5)

    x = jax.random.normal(kx, (batch, seq, in_dim), dtype=dtype)
    # nn.Linear-style weight (deterministic synthetic init).
    weight = (jax.random.uniform(kw, (out_dim, in_dim), dtype=dtype) * 2 - 1) / jnp.sqrt(in_dim)
    # kaiming_uniform_(a=sqrt(5)) -> bound = 1/sqrt(in_dim)
    lora_a = (jax.random.uniform(ka, (rank, in_dim), dtype=dtype) * 2 - 1) / jnp.sqrt(in_dim)
    # Reference inits lora_b to zeros (LoRA path would be trivially zero);
    # use small random values here so the LoRA/DoRA path is exercised.
    lora_b = jax.random.normal(kb, (out_dim, rank), dtype=dtype) * 0.05
    magnitude = jax.random.normal(km, (out_dim,), dtype=dtype)

    # Dropout p=0.0 -> identity (reference module default), so no mask is applied.
    # TODO(synk): the reference module's debug `print('result mean', ...)` is not reproduced.
    x2d = x.reshape(batch * seq, in_dim)

    ref = dora_reference(x2d, weight, lora_a, lora_b, magnitude, scaling=scaling)

    # f32 compute path (matches the reference tightly).
    out_f32 = dora_forward(x2d, weight, lora_a, lora_b, magnitude,
                           scaling=scaling, compute_dtype=jnp.float32)
    out_f32 = jax.block_until_ready(out_f32)
    assert out_f32.shape == (batch * seq, out_dim)
    assert jnp.allclose(out_f32, ref, atol=1e-4, rtol=1e-4), "f32 kernel mismatch vs reference"

    # Default bf16 compute path (MXU-friendly); looser tolerance due to bf16 inputs.
    out_bf16 = dora_forward(x2d, weight, lora_a, lora_b, magnitude, scaling=scaling)
    out_bf16 = jax.block_until_ready(out_bf16)
    assert jnp.allclose(out_bf16, ref, atol=1e-1, rtol=1e-1), "bf16 kernel mismatch vs reference"

    print("KERNEL_OK")
</pallas_src>

<mosaic_0001>
module attributes {stable_mosaic.version = 11 : i64} {
  func.func @_dora_scale_kernel(%arg0: i32, %arg1: i32, %arg2: memref<32x32xf32, #tpu.memory_space<vmem>>, %arg3: memref<4x32xf32, #tpu.memory_space<vmem>>, %arg4: memref<32x4xf32, #tpu.memory_space<vmem>>, %arg5: memref<32x1xf32, #tpu.memory_space<vmem>>, %arg6: memref<32x1xf32, #tpu.memory_space<vmem>>, %arg7: memref<32x1xf32, #tpu.memory_space<vmem>>) attributes {dimension_semantics = [#tpu.dimension_semantics<parallel>, #tpu.dimension_semantics<arbitrary>], iteration_bounds = array<i64: 1, 1>, scalar_prefetch = 0 : i64, scratch_operands = 1 : i64, tpu.core_type = #tpu.core_type<tc>, window_params = [{transform_indices = @transform_0, window_bounds = array<i64: 32, 32>}, {transform_indices = @transform_1, window_bounds = array<i64: 4, 32>}, {transform_indices = @transform_2, window_bounds = array<i64: 32, 4>}, {transform_indices = @transform_3, window_bounds = array<i64: 32, 1>}, {transform_indices = @transform_4, window_bounds = array<i64: 32, 1>}]} {
    %c0_i32 = arith.constant 0 : i32
    %0 = arith.cmpi eq, %arg1, %c0_i32 : i32
    %1 = arith.extui %0 : i1 to i32
    %c0_i32_0 = arith.constant 0 : i32
    %2 = arith.cmpi ne, %1, %c0_i32_0 : i32
    scf.if %2 {
      %cst_14 = arith.constant 0.000000e+00 : f32
      %19 = vector.broadcast %cst_14 : f32 to vector<32x1xf32>
      %c0_15 = arith.constant 0 : index
      %c0_16 = arith.constant 0 : index
      %20 = vector.load %arg7[%c0_15, %c0_16] : memref<32x1xf32, #tpu.memory_space<vmem>>, vector<32x1xf32>
      tpu.vector_store %arg7[%c0_15, %c0_16], %19 {strides = array<i32>} : memref<32x1xf32, #tpu.memory_space<vmem>>, vector<32x1xf32>,
    } else {
    }
    %c0 = arith.constant 0 : index
    %c0_1 = arith.constant 0 : index
    %3 = vector.load %arg4[%c0, %c0_1] : memref<32x4xf32, #tpu.memory_space<vmem>>, vector<32x4xf32>
    %c0_2 = arith.constant 0 : index
    %c0_3 = arith.constant 0 : index
    %4 = vector.load %arg3[%c0_2, %c0_3] : memref<4x32xf32, #tpu.memory_space<vmem>>, vector<4x32xf32>
    %cst = arith.constant dense<0.000000e+00> : vector<32x32xf32>
    %5 = tpu.matmul %3, %4, %cst {dimension_numbers = #tpu.dot_dimension_numbers<[1], [0], [0], [1], [0, 0, 1, 1], [], []>} : vector<32x4xf32>, vector<4x32xf32>, vector<32x32xf32> -> vector<32x32xf32>
    %c0_4 = arith.constant 0 : index
    %c0_5 = arith.constant 0 : index
    %6 = vector.load %arg2[%c0_4, %c0_5] : memref<32x32xf32, #tpu.memory_space<vmem>>, vector<32x32xf32>
    %cst_6 = arith.constant 2.000000e+00 : f32
    %7 = vector.broadcast %cst_6 : f32 to vector<32x32xf32>
    %8 = arith.mulf %7, %5 : vector<32x32xf32>
    %9 = arith.addf %6, %8 : vector<32x32xf32>
    %c0_7 = arith.constant 0 : index
    %c0_8 = arith.constant 0 : index
    %10 = vector.load %arg7[%c0_7, %c0_8] : memref<32x1xf32, #tpu.memory_space<vmem>>, vector<32x1xf32>
    %11 = arith.mulf %9, %9 : vector<32x32xf32>
    %cst_9 = arith.constant dense<0.000000e+00> : vector<32xf32>
    %12 = vector.multi_reduction <add>, %11, %cst_9 [1] : vector<32x32xf32> to vector<32xf32>
    %13 = vector.shape_cast %12 : vector<32xf32> to vector<32x1xf32>
    %14 = arith.addf %10, %13 : vector<32x1xf32>
    %c0_10 = arith.constant 0 : index
    %c0_11 = arith.constant 0 : index
    %15 = vector.load %arg7[%c0_10, %c0_11] : memref<32x1xf32, #tpu.memory_space<vmem>>, vector<32x1xf32>
    tpu.vector_store %arg7[%c0_10, %c0_11], %14 {strides = array<i32>} : memref<32x1xf32, #tpu.memory_space<vmem>>, vector<32x1xf32>,
    %c0_i32_12 = arith.constant 0 : i32
    %16 = arith.cmpi eq, %arg1, %c0_i32_12 : i32
    %17 = arith.extui %16 : i1 to i32
    %c0_i32_13 = arith.constant 0 : i32
    %18 = arith.cmpi ne, %17, %c0_i32_13 : i32
    scf.if %18 {
      %c0_14 = arith.constant 0 : index
      %c0_15 = arith.constant 0 : index
      %19 = vector.load %arg7[%c0_14, %c0_15] : memref<32x1xf32, #tpu.memory_space<vmem>>, vector<32x1xf32>
      %20 = math.sqrt %19 : vector<32x1xf32>
      %c0_16 = arith.constant 0 : index
      %c0_17 = arith.constant 0 : index
      %21 = vector.load %arg5[%c0_16, %c0_17] : memref<32x1xf32, #tpu.memory_space<vmem>>, vector<32x1xf32>
      %22 = tpu.reciprocal %20 : vector<32x1xf32> -> vector<32x1xf32>
      %23 = arith.mulf %21, %22 : vector<32x1xf32>
      %c0_18 = arith.constant 0 : index
      %c0_19 = arith.constant 0 : index
      %24 = vector.load %arg6[%c0_18, %c0_19] : memref<32x1xf32, #tpu.memory_space<vmem>>, vector<32x1xf32>
      tpu.vector_store %arg6[%c0_18, %c0_19], %23 {strides = array<i32>} : memref<32x1xf32, #tpu.memory_space<vmem>>, vector<32x1xf32>,
    } else {
    }
    return
  }
  func.func @transform_0(%arg0: i32, %arg1: i32) -> (i32, i32) {
    %c0_i32 = arith.constant 0 : i32
    return %arg0, %arg1 : i32, i32
  }
  func.func @transform_1(%arg0: i32, %arg1: i32) -> (i32, i32) {
    %c0_i32 = arith.constant 0 : i32
    %c0_i32_0 = arith.constant 0 : i32
    return %c0_i32, %arg1 : i32, i32
  }
  func.func @transform_2(%arg0: i32, %arg1: i32) -> (i32, i32) {
    %c0_i32 = arith.constant 0 : i32
    %c0_i32_0 = arith.constant 0 : i32
    return %arg0, %c0_i32 : i32, i32
  }
  func.func @transform_3(%arg0: i32, %arg1: i32) -> (i32, i32) {
    %c0_i32 = arith.constant 0 : i32
    %c0_i32_0 = arith.constant 0 : i32
    return %arg0, %c0_i32 : i32, i32
  }
  func.func @transform_4(%arg0: i32, %arg1: i32) -> (i32, i32) {
    %c0_i32 = arith.constant 0 : i32
    %c0_i32_0 = arith.constant 0 : i32
    return %arg0, %c0_i32 : i32, i32
  }
}

</mosaic_0001>

<bundles_post_ra>
// kernel: tpu_custom_call.1
= control target key start
LH: loop header
LB: loop body
LE: loop exit
PB: predicated region body
PF: predicated region fallthrough
CT: control target
= control target key end

     0   :  { %vm44_vm0 = vcmask 1043456   ;;  %vm31_vm1 = vcmask 31744   ;;  %vm21_vm2 = vcmask 7168   ;;  %v267_v5 = vmov 0.0   ;;  %s356_s1 = inlined_call_operand.vmem [shape: f32[4,32], index: 1, kind: input, shape index: {}]   ;;  %s357_s2 = inlined_call_operand.vmem [shape: f32[32,4], index: 2, kind: input, shape index: {}]   ;;  %s358_s0 = inlined_call_operand.vmem [shape: f32[32,32], index: 0, kind: input, shape index: {}]   ;;  %s359_s3 = inlined_call_operand.vmem [shape: f32[32,1], index: 3, kind: input, shape index: {}]   ;;  %s360_s4 = inlined_call_operand.vmem [shape: f32[32,1], index: 4, kind: output, shape index: {}]  }
   0x1   :  { %v30_v0 = vld [vmem:[%s356_s1] sm:$0xf]  ;;  %v28_v2 = vld [vmem:[%s357_s2 + $0x10] sm:$0xff]  ;;  %v27_v3 = vld [vmem:[%s357_s2 + $0x8] sm:$0xff]  ;;  %24 = vst.msk [vmem:[#allocation2 + $0x10] sm:$0xff] %vm21_vm2, %v267_v5  ;;  %vm153_vm3 = vcmask 261120  }
   0x2   :  { %v26_v1 = vld [vmem:[%s357_s2] sm:$0xff]  ;;  %240 = vmatprep.subr.msk.mxu0 %vm44_vm0, %v30_v0  ;;  %248 = vmatprep.subr.msk.mxu1 %vm44_vm0, %v30_v0  ;;  %v29_v4 = vld [vmem:[%s357_s2 + $0x18] sm:$0xff]  ;;  %22 = vst.msk [vmem:[#allocation2] sm:$0xff] %vm21_vm2, %v267_v5  ;;  %23 = vst.msk [vmem:[#allocation2 + $0x8] sm:$0xff] %vm21_vm2, %v267_v5 }
   0x3   :  { %241 = vmatpush3.msk.msra.mxu0 %vm44_vm0, %v30_v0  ;;  %249 = vmatpush3.msk.msra.mxu1 %vm44_vm0, %v30_v0  ;;  %25 = vst.msk [vmem:[#allocation2 + $0x18] sm:$0xff] %vm21_vm2, %v267_v5  ;;  %v134_v8 = vld [vmem:[%s358_s0 + $0x8] sm:$0xff]  ;;  %v136_v11 = vld [vmem:[%s358_s0 + $0x18] sm:$0xff]  ;;  %v133_v13 = vld [vmem:[%s358_s0] sm:$0xff] }
   0x4   :  { %242 = vmatprep.mubr.msk.f32.mxu0 %vm31_vm1, %v26_v1  ;;  %245 = vmatprep.mubr.msk.f32.mxu1 %vm31_vm1, %v28_v2  ;;  %v135_v15 = vld [vmem:[%s358_s0 + $0x10] sm:$0xff] }
   0x5   :  { %243 = vmatmul.mubr.msk.f32.vlgmr.msra.gmra.mxu0 %vm31_vm1, %v27_v3  ;;  %246 = vmatmul.mubr.msk.f32.vlgmr.msra.gmra.mxu1 %vm31_vm1, %v29_v4  ;;  %v212_v2 = vld [vmem:[%s359_s3 + $0x10] sm:$0xff]  ;;  %v210_v3 = vld [vmem:[%s359_s3] sm:$0xff] }
   0x8   :  { %v147_v30 = vld [vmem:[#allocation2 + $0x10] sm:$0xff] }
   0x9   :  { %v145_v31 = vld [vmem:[#allocation2] sm:$0xff]  ;;  %v146_v37 = vld [vmem:[#allocation2 + $0x8] sm:$0xff] }
   0xa   :  { %v148_v36 = vld [vmem:[#allocation2 + $0x18] sm:$0xff] }
  0xc5   :  { %v244_v6 = vpop.f32.mrf.mxu0  ;;  %v247_v7 = vpop.f32.mrf.mxu1 }
  0xc6   :  { %v138_v9 = vmul.f32 2.0, %v244_v6  ;;  %v140_v10 = vmul.f32 2.0, %v247_v7 }
  0xc7   :  { %v114_v12 = vpop.f32.mrf.mxu0  ;;  %v124_v14 = vpop.f32.mrf.mxu1 }
  0xc8   :  { %v137_v16 = vmul.f32 2.0, %v114_v12  ;;  %v139_v17 = vmul.f32 2.0, %v124_v14  ;;  %v142_v18 = vadd.f32 %v138_v9, %v134_v8  ;;  %v144_v19 = vadd.f32 %v140_v10, %v136_v11  ;;  %v213_v8 = vld [vmem:[%s359_s3 + $0x18] sm:$0xff]  ;;  %v211_v9 = vld [vmem:[%s359_s3 + $0x8] sm:$0xff] }
  0xca   :  { %v141_v20 = vadd.f32 %v137_v16, %v133_v13  ;;  %v143_v21 = vadd.f32 %v139_v17, %v135_v15  ;;  %v152_v26 = vmul.f32 %v144_v19, %v144_v19  ;;  %v150_v27 = vmul.f32 %v142_v18, %v142_v18 }
  0xcc   :  { %v151_v22 = vmul.f32 %v143_v21, %v143_v21  ;;  %v149_v23 = vmul.f32 %v141_v20, %v141_v20  ;;  %v163_v28 = vsel %vm153_vm3, %v152_v26, 0.0  ;;  %v157_v29 = vsel %vm153_vm3, %v150_v27, 0.0 }
  0xce   :  { %v160_v24 = vsel %vm153_vm3, %v151_v22, 0.0  ;;  %v154_v25 = vsel %vm153_vm3, %v149_v23, 0.0 }
  0xcf   :  { %161 = vadd.xlane.f32.xlu1 %v160_v24  ;;  %155 = vadd.xlane.f32.xlu0 %v154_v25 }
  0xd3   :  { %164 = vadd.xlane.f32.xlu1 %v163_v28  ;;  %158 = vadd.xlane.f32.xlu0 %v157_v29 }
 0x158   :  { %v162_v32 = vpop.xlane.xlu1 %161  ;;  %v156_v33 = vpop.xlane.xlu0 %155 }
 0x159   :  { %v168_v34 = vadd.f32 %v162_v32, %v147_v30  ;;  %v166_v35 = vadd.f32 %v156_v33, %v145_v31 }
 0x15b   :  { %173 = vst.msk [vmem:[#allocation2 + $0x10] sm:$0xff] %vm21_vm2, %v168_v34  ;;  %171 = vst.msk [vmem:[#allocation2] sm:$0xff] %vm21_vm2, %v166_v35 }
 0x15c   :  { %v165_v38 = vpop.xlane.xlu1 %164  ;;  %v159_v39 = vpop.xlane.xlu0 %158 }
 0x15d   :  { %v169_v40 = vadd.f32 %v165_v38, %v148_v36  ;;  %v167_v41 = vadd.f32 %v159_v39, %v146_v37 }
 0x15f   :  { %174 = vst.msk [vmem:[#allocation2 + $0x18] sm:$0xff] %vm21_vm2, %v169_v40  ;;  %172 = vst.msk [vmem:[#allocation2 + $0x8] sm:$0xff] %vm21_vm2, %v167_v41 }
 0x162   :  { %v180_v42 = vld [vmem:[#allocation2 + $0x10] sm:$0xff]  ;;  %v178_v43 = vld [vmem:[#allocation2] sm:$0xff] }
 0x163   :  { %251 = vrsqrt.f32 %v180_v42  ;;  %vm198_vm4 = vcmp.eq.f32.partialorder %v180_v42, inf  ;;  %v201_v49 = vand.u32 2147483648, %v180_v42  ;;  %vm200_vm5 = vcmp.eq.f32.partialorder %v180_v42, 0.0 }
 0x164   :  { %253 = vrsqrt.f32 %v178_v43  ;;  %vm184_vm6 = vcmp.eq.f32.partialorder %v178_v43, inf  ;;  %v187_v52 = vand.u32 2147483648, %v178_v43  ;;  %vm186_vm7 = vcmp.eq.f32.partialorder %v178_v43, 0.0 }
 0x166   :  { %v181_v44 = vld [vmem:[#allocation2 + $0x18] sm:$0xff]  ;;  %v179_v45 = vld [vmem:[#allocation2 + $0x8] sm:$0xff] }
 0x167   :  { %255 = vrsqrt.f32 %v181_v44  ;;  %vm205_vm8 = vcmp.eq.f32.partialorder %v181_v44, inf  ;;  %v208_v59 = vand.u32 2147483648, %v181_v44  ;;  %vm207_vm9 = vcmp.eq.f32.partialorder %v181_v44, 0.0 }
 0x168   :  { %257 = vrsqrt.f32 %v179_v45  ;;  %vm191_vm10 = vcmp.eq.f32.partialorder %v179_v45, inf  ;;  %v194_v62 = vand.u32 2147483648, %v179_v45  ;;  %vm193_vm11 = vcmp.eq.f32.partialorder %v179_v45, 0.0 }
 0x170   :  { %v252_v46 = vpop.eup %251 }
 0x171   :  { %v254_v47 = vpop.eup %253  ;;  %v197_v48 = vmul.f32 %v252_v46, %v180_v42 }
 0x172   :  { %v183_v50 = vmul.f32 %v254_v47, %v178_v43 }
 0x173   :  { %v199_v51 = vsel %vm198_vm4, %v180_v42, %v197_v48 }
 0x174   :  { %v256_v53 = vpop.eup %255  ;;  %v202_v54 = vsel %vm200_vm5, %v201_v49, %v199_v51  ;;  %v185_v55 = vsel %vm184_vm6, %v178_v43, %v183_v50 }
 0x175   :  { %v258_v56 = vpop.eup %257  ;;  %259 = vrcp.f32 %v202_v54  ;;  %v188_v57 = vsel %vm186_vm7, %v187_v52, %v185_v55  ;;  %v204_v58 = vmul.f32 %v256_v53, %v181_v44 }
 0x176   :  { %261 = vrcp.f32 %v188_v57  ;;  %v190_v60 = vmul.f32 %v258_v56, %v179_v45 }
 0x177   :  { %v206_v61 = vsel %vm205_vm8, %v181_v44, %v204_v58 }
 0x178   :  { %v209_v63 = vsel %vm207_vm9, %v208_v59, %v206_v61  ;;  %v192_v0 = vsel %vm191_vm10, %v179_v45, %v190_v60 }
 0x179   :  { %263 = vrcp.f32 %v209_v63  ;;  %v195_v1 = vsel %vm193_vm11, %v194_v62, %v192_v0 }
 0x17a   :  { %265 = vrcp.f32 %v195_v1 }
 0x182   :  { %v260_v4 = vpop.eup %259 }
 0x183   :  { %v262_v5 = vpop.eup %261  ;;  %v220_v6 = vmul.f32 %v260_v4, %v212_v2 }
 0x184   :  { %v218_v7 = vmul.f32 %v262_v5, %v210_v3 }
 0x185   :  { %224 = vst.msk [vmem:[%s360_s4 + $0x10] sm:$0xff] %vm21_vm2, %v220_v6 }
 0x186   :  { %v264_v10 = vpop.eup %263  ;;  %222 = vst.msk [vmem:[%s360_s4] sm:$0xff] %vm21_vm2, %v218_v7 }
 0x187   :  { %v266_v11 = vpop.eup %265  ;;  %v221_v12 = vmul.f32 %v264_v10, %v213_v8 }
 0x188   :  { %v219_v13 = vmul.f32 %v266_v11, %v211_v9 }
 0x189   :  { %225 = vst.msk [vmem:[%s360_s4 + $0x18] sm:$0xff] %vm21_vm2, %v221_v12 }
 0x18a   :  { %223 = vst.msk [vmem:[%s360_s4 + $0x8] sm:$0xff] %vm21_vm2, %v219_v13 }

</bundles_post_ra>
